<compile_context>
chip_gen: v6e
topology: v6e:2x2x1
jax: 0.10.0
libtpu: 0.0.40
codegen_flags: <defaults>
</compile_context>

<pallas_src>
import functools

import jax
import jax.numpy as jnp
from jax import lax
from jax.experimental import pallas as pl
from jax.experimental.pallas import tpu as pltpu


def _transform_first(n_dst, n_src, f_in, f_out):
    """True if A @ (X @ W) is fewer MXU FLOPs than (A @ X) @ W."""
    agg_first = n_dst * n_src * f_in + n_dst * f_in * f_out
    xform_first = n_src * f_in * f_out + n_dst * n_src * f_out
    return xform_first < agg_first


# ---------------- fused Pallas kernel (single launch) ----------------

def fused_gcn_kernel(n_dst_ref, a0_ref, x_ref, w1_ref, b1_ref,
                     a1_ref, w2_ref, b2_ref, w3_ref, b3_ref, o_ref,
                     *, xform_first_1, xform_first_2):
    f32 = jnp.float32
    bf16 = jnp.bfloat16

    # ----- layer 1: h1 = relu((A0 @ X) @ W1 + b1), association picked by FLOPs
    if xform_first_1:
        xw = jnp.dot(x_ref[...], w1_ref[...], preferred_element_type=f32)
        z1 = jnp.dot(a0_ref[...], xw.astype(bf16), preferred_element_type=f32)
    else:
        ax = jnp.dot(a0_ref[...], x_ref[...], preferred_element_type=f32)
        z1 = jnp.dot(ax.astype(bf16), w1_ref[...], preferred_element_type=f32)
    h1 = jnp.maximum(z1 + b1_ref[...], 0.0).astype(bf16)

    # ----- layer 2: h2 = relu((A1 @ h1) @ W2 + b2)
    if xform_first_2:
        hw = jnp.dot(h1, w2_ref[...], preferred_element_type=f32)
        z2 = jnp.dot(a1_ref[...], hw.astype(bf16), preferred_element_type=f32)
    else:
        ah = jnp.dot(a1_ref[...], h1, preferred_element_type=f32)
        z2 = jnp.dot(ah.astype(bf16), w2_ref[...], preferred_element_type=f32)
    h2 = jnp.maximum(z2 + b2_ref[...], 0.0).astype(bf16)

    # ----- readout: mean_nodes(h2) @ W3 + b3  (mean commutes with the linear)
    logits_rows = jnp.dot(h2, w3_ref[...], preferred_element_type=f32)
    n_dst = n_dst_ref[0]                                   # true dst count (SMEM)
    row_ids = lax.broadcasted_iota(jnp.int32, logits_rows.shape, 0)
    masked = jnp.where(row_ids < n_dst, logits_rows, 0.0)  # robust to bucketed pads
    inv_n = 1.0 / n_dst.astype(f32)
    o_ref[...] = jnp.sum(masked, axis=0, keepdims=True) * inv_n + b3_ref[...]


# ---------------- wrapper ----------------

def prepare_params(params):
    """One-time bf16 cast of the matmul weights (biases stay f32)."""
    return dict(
        w1=params["w1"].astype(jnp.bfloat16), b1=params["b1"],
        w2=params["w2"].astype(jnp.bfloat16), b2=params["b2"],
        w3=params["w3"].astype(jnp.bfloat16), b3=params["b3"],
    )


def gcn_forward(prepared, blocks, inputs):
    """Fused forward of the 2-layer GCN + mean-readout + final Linear."""
    A0, A1 = blocks
    n_dst0, n_src0 = A0.shape
    n_dst1 = A1.shape[0]
    in_feats = inputs.shape[1]
    hidden = prepared["w1"].shape[1]
    num_classes = prepared["w3"].shape[1]

    bf16 = jnp.bfloat16
    a0 = A0.astype(bf16)            # 0/1 adjacency: exact in bf16
    a1 = A1.astype(bf16)
    x = inputs.astype(bf16)
    n_dst = jnp.array([n_dst1], jnp.int32)

    kernel = functools.partial(
        fused_gcn_kernel,
        xform_first_1=_transform_first(n_dst0, n_src0, in_feats, hidden),
        xform_first_2=_transform_first(n_dst1, n_dst0, hidden, hidden),
    )

    smem = pl.BlockSpec(memory_space=pltpu.MemorySpace.SMEM)
    vmem = pl.BlockSpec(memory_space=pltpu.MemorySpace.VMEM)

    return pl.pallas_call(
        kernel,
        out_shape=jax.ShapeDtypeStruct((1, num_classes), jnp.float32),
        in_specs=[smem] + [vmem] * 9,
        out_specs=vmem,
    )(n_dst, a0, x, prepared["w1"], prepared["b1"],
      a1, prepared["w2"], prepared["b2"],
      prepared["w3"], prepared["b3"])


def init_params(key, in_feats, hidden, num_classes):
    ks = jax.random.split(key, 6)

    def linear_init(kw, kb, fin, fout):
        bound = 1.0 / jnp.sqrt(fin)
        w = jax.random.uniform(kw, (fin, fout), jnp.float32, -bound, bound)
        b = jax.random.uniform(kb, (1, fout), jnp.float32, -bound, bound)
        return w, b

    w1, b1 = linear_init(ks[0], ks[1], in_feats, hidden)
    w2, b2 = linear_init(ks[2], ks[3], hidden, hidden)
    w3, b3 = linear_init(ks[4], ks[5], hidden, num_classes)
    return dict(w1=w1, b1=b1, w2=w2, b2=b2, w3=w3, b3=b3)


if __name__ == "__main__":
    in_feats, hidden, num_classes = 16, 32, 4
    n_src0, n_dst0, n_dst1 = 12, 8, 4   # block0: 12->8 nodes, block1: 8->4 nodes

    key = jax.random.PRNGKey(0)
    k_par, k_x, k_a0, k_a1 = jax.random.split(key, 4)

    params = init_params(k_par, in_feats, hidden, num_classes)
    prepared = prepare_params(params)   # bf16 weights, cast once

    inputs = jax.random.normal(k_x, (n_src0, in_feats), jnp.float32)
    # dense block adjacencies (dst x src), deterministic 0/1 pattern
    A0 = jax.random.bernoulli(k_a0, 0.4, (n_dst0, n_src0)).astype(jnp.float32)
    A1 = jax.random.bernoulli(k_a1, 0.4, (n_dst1, n_dst0)).astype(jnp.float32)

    fwd = jax.jit(gcn_forward)
    out = jax.block_until_ready(fwd(prepared, (A0, A1), inputs))

    # pure-f32 reference of the original module's math (mean-then-linear order)
    h1 = jnp.maximum(A0 @ inputs @ params["w1"] + params["b1"], 0.0)
    h2 = jnp.maximum(A1 @ h1 @ params["w2"] + params["b2"], 0.0)
    ref = jnp.mean(h2, axis=0, keepdims=True) @ params["w3"] + params["b3"]

    assert out.shape == (1, num_classes)
    # bf16 operands with f32 accumulation: allow ~1% relative deviation
    assert jnp.allclose(out, ref, atol=5e-2, rtol=5e-2), (out, ref)

    print("KERNEL_OK")
</pallas_src>

<mosaic_0001>
module attributes {stable_mosaic.version = 11 : i64} {
  func.func @fused_gcn_kernel(%arg0: memref<1xi32, #tpu.memory_space<smem>>, %arg1: memref<8x12xbf16, #tpu.memory_space<vmem>>, %arg2: memref<12x16xbf16, #tpu.memory_space<vmem>>, %arg3: memref<16x32xbf16, #tpu.memory_space<vmem>>, %arg4: memref<1x32xf32, #tpu.memory_space<vmem>>, %arg5: memref<4x8xbf16, #tpu.memory_space<vmem>>, %arg6: memref<32x32xbf16, #tpu.memory_space<vmem>>, %arg7: memref<1x32xf32, #tpu.memory_space<vmem>>, %arg8: memref<32x4xbf16, #tpu.memory_space<vmem>>, %arg9: memref<1x4xf32, #tpu.memory_space<vmem>>, %arg10: memref<1x4xf32, #tpu.memory_space<vmem>>) attributes {dimension_semantics = [], scalar_prefetch = 0 : i64, scratch_operands = 0 : i64, tpu.core_type = #tpu.core_type<tc>} {
    %c0 = arith.constant 0 : index
    %c0_0 = arith.constant 0 : index
    %0 = vector.load %arg1[%c0, %c0_0] : memref<8x12xbf16, #tpu.memory_space<vmem>>, vector<8x12xbf16>
    %c0_1 = arith.constant 0 : index
    %c0_2 = arith.constant 0 : index
    %1 = vector.load %arg2[%c0_1, %c0_2] : memref<12x16xbf16, #tpu.memory_space<vmem>>, vector<12x16xbf16>
    %cst = arith.constant dense<0.000000e+00> : vector<8x16xf32>
    %2 = tpu.matmul %0, %1, %cst {dimension_numbers = #tpu.dot_dimension_numbers<[1], [0], [0], [1], [0, 0, 1, 1], [], []>} : vector<8x12xbf16>, vector<12x16xbf16>, vector<8x16xf32> -> vector<8x16xf32>
    %3 = arith.truncf %2 : vector<8x16xf32> to vector<8x16xbf16>
    %c0_3 = arith.constant 0 : index
    %c0_4 = arith.constant 0 : index
    %4 = vector.load %arg3[%c0_3, %c0_4] : memref<16x32xbf16, #tpu.memory_space<vmem>>, vector<16x32xbf16>
    %cst_5 = arith.constant dense<0.000000e+00> : vector<8x32xf32>
    %5 = tpu.matmul %3, %4, %cst_5 {dimension_numbers = #tpu.dot_dimension_numbers<[1], [0], [0], [1], [0, 0, 1, 1], [], []>} : vector<8x16xbf16>, vector<16x32xbf16>, vector<8x32xf32> -> vector<8x32xf32>
    %c0_6 = arith.constant 0 : index
    %c0_7 = arith.constant 0 : index
    %6 = vector.load %arg4[%c0_6, %c0_7] : memref<1x32xf32, #tpu.memory_space<vmem>>, vector<1x32xf32>
    %7 = vector.broadcast %6 : vector<1x32xf32> to vector<8x32xf32>
    %8 = arith.addf %5, %7 : vector<8x32xf32>
    %cst_8 = arith.constant 0.000000e+00 : f32
    %9 = vector.broadcast %cst_8 : f32 to vector<8x32xf32>
    %10 = arith.maximumf %8, %9 : vector<8x32xf32>
    %11 = arith.truncf %10 : vector<8x32xf32> to vector<8x32xbf16>
    %c0_9 = arith.constant 0 : index
    %c0_10 = arith.constant 0 : index
    %12 = vector.load %arg5[%c0_9, %c0_10] : memref<4x8xbf16, #tpu.memory_space<vmem>>, vector<4x8xbf16>
    %cst_11 = arith.constant dense<0.000000e+00> : vector<4x32xf32>
    %13 = tpu.matmul %12, %11, %cst_11 {dimension_numbers = #tpu.dot_dimension_numbers<[1], [0], [0], [1], [0, 0, 1, 1], [], []>} : vector<4x8xbf16>, vector<8x32xbf16>, vector<4x32xf32> -> vector<4x32xf32>
    %14 = arith.truncf %13 : vector<4x32xf32> to vector<4x32xbf16>
    %c0_12 = arith.constant 0 : index
    %c0_13 = arith.constant 0 : index
    %15 = vector.load %arg6[%c0_12, %c0_13] : memref<32x32xbf16, #tpu.memory_space<vmem>>, vector<32x32xbf16>
    %cst_14 = arith.constant dense<0.000000e+00> : vector<4x32xf32>
    %16 = tpu.matmul %14, %15, %cst_14 {dimension_numbers = #tpu.dot_dimension_numbers<[1], [0], [0], [1], [0, 0, 1, 1], [], []>} : vector<4x32xbf16>, vector<32x32xbf16>, vector<4x32xf32> -> vector<4x32xf32>
    %c0_15 = arith.constant 0 : index
    %c0_16 = arith.constant 0 : index
    %17 = vector.load %arg7[%c0_15, %c0_16] : memref<1x32xf32, #tpu.memory_space<vmem>>, vector<1x32xf32>
    %18 = vector.broadcast %17 : vector<1x32xf32> to vector<4x32xf32>
    %19 = arith.addf %16, %18 : vector<4x32xf32>
    %cst_17 = arith.constant 0.000000e+00 : f32
    %20 = vector.broadcast %cst_17 : f32 to vector<4x32xf32>
    %21 = arith.maximumf %19, %20 : vector<4x32xf32>
    %22 = arith.truncf %21 : vector<4x32xf32> to vector<4x32xbf16>
    %c0_18 = arith.constant 0 : index
    %c0_19 = arith.constant 0 : index
    %23 = vector.load %arg8[%c0_18, %c0_19] : memref<32x4xbf16, #tpu.memory_space<vmem>>, vector<32x4xbf16>
    %cst_20 = arith.constant dense<0.000000e+00> : vector<4x4xf32>
    %24 = tpu.matmul %22, %23, %cst_20 {dimension_numbers = #tpu.dot_dimension_numbers<[1], [0], [0], [1], [0, 0, 1, 1], [], []>} : vector<4x32xbf16>, vector<32x4xbf16>, vector<4x4xf32> -> vector<4x4xf32>
    %c0_21 = arith.constant 0 : index
    %25 = memref.load %arg0[%c0_21] : memref<1xi32, #tpu.memory_space<smem>>
    %26 = tpu.iota {dimensions = array<i32: 0>} : vector<4x4xi32>
    %27 = vector.broadcast %25 : i32 to vector<4x4xi32>
    %28 = arith.cmpi slt, %26, %27 : vector<4x4xi32>
    %cst_22 = arith.constant 0.000000e+00 : f32
    %29 = vector.broadcast %cst_22 : f32 to vector<4x4xf32>
    %30 = arith.select %28, %24, %29 : vector<4x4xi1>, vector<4x4xf32>
    %31 = arith.sitofp %25 : i32 to f32
    %cst_23 = arith.constant 1.000000e+00 : f32
    %32 = arith.divf %cst_23, %31 : f32
    %cst_24 = arith.constant dense<0.000000e+00> : vector<4xf32>
    %33 = vector.multi_reduction <add>, %30, %cst_24 [0] : vector<4x4xf32> to vector<4xf32>
    %34 = vector.shape_cast %33 : vector<4xf32> to vector<1x4xf32>
    %35 = vector.broadcast %32 : f32 to vector<1x4xf32>
    %36 = arith.mulf %34, %35 : vector<1x4xf32>
    %c0_25 = arith.constant 0 : index
    %c0_26 = arith.constant 0 : index
    %37 = vector.load %arg9[%c0_25, %c0_26] : memref<1x4xf32, #tpu.memory_space<vmem>>, vector<1x4xf32>
    %38 = arith.addf %36, %37 : vector<1x4xf32>
    %c0_27 = arith.constant 0 : index
    %c0_28 = arith.constant 0 : index
    %39 = vector.load %arg10[%c0_27, %c0_28] : memref<1x4xf32, #tpu.memory_space<vmem>>, vector<1x4xf32>
    tpu.vector_store %arg10[%c0_27, %c0_28], %38 {strides = array<i32>} : memref<1x4xf32, #tpu.memory_space<vmem>>, vector<1x4xf32>,
    return
  }
}

</mosaic_0001>

<bundles_post_ra>
// kernel: gcn_forward.1
= control target key start
LH: loop header
LB: loop body
LE: loop exit
PB: predicated region body
PF: predicated region fallthrough
CT: control target
= control target key end

     0   :  { %vm50_vm0 = vcmask 1045504   ;;  %v466_v0 = vmov 0.0   ;;  %vm467_vm1 = vmmov 0   ;;  %vm46_vm2 = vcmask 97280   ;;  %s573_s0 = inlined_call_operand.<no memory space> [shape: s32[1], index: 0, kind: input, shape index: {}]   ;;  %s574_s1 = inlined_call_operand.vmem [shape: bf16[8,12], index: 1, kind: input, shape index: {}]   ;;  %s575_s2 = inlined_call_operand.vmem [shape: bf16[12,16], index: 2, kind: input, shape index: {}]   ;;  %s576_s3 = inlined_call_operand.vmem [shape: bf16[16,32], index: 3, kind: input, shape index: {}]   ;;  %s577_s4 = inlined_call_operand.vmem [shape: f32[1,32], index: 4, kind: input, shape index: {}]   ;;  %s578_s5 = inlined_call_operand.vmem [shape: bf16[4,8], index: 5, kind: input, shape index: {}]   ;;  %s579_s6 = inlined_call_operand.vmem [shape: bf16[32,32], index: 6, kind: input, shape index: {}]   ;;  %s580_s7 = inlined_call_operand.vmem [shape: f32[1,32], index: 7, kind: input, shape index: {}]   ;;  %s581_s8 = inlined_call_operand.vmem [shape: bf16[32,4], index: 8, kind: input, shape index: {}]   ;;  %s582_s9 = inlined_call_operand.vmem [shape: f32[1,4], index: 9, kind: input, shape index: {}]   ;;  %s583_s10 = inlined_call_operand.hbm [shape: f32[1,4], index: 10, kind: output, shape index: {}]  }
   0x1   :  { %397 = vmatprep.subr.bf16.mxu0 %v466_v0  ;;  %v436_v1 = vld [vmem:[%s575_s2] sm:$0x3f]   ;;  %403 = vmatprep.subr.bf16.mxu1 %v466_v0 }
   0x2   :  { %399 = vmatprep.mubr.msk.bf16.mxu0 %vm467_vm1, %v466_v0  ;;  %v38_v2 = vld [vmem:[%s574_s1] sm:$0xf]  ;;  %405 = vmatprep.mubr.msk.bf16.mxu1 %vm467_vm1, %v466_v0  ;;  %v52_v3 = vsel %vm50_vm0, %v436_v1, 0 }
   0x3   :  { %398 = vmatpush3.bf16.msra.mxu0 %v52_v3 }
   0x4   :  { %409 = vmatprep.subr.bf16.mxu0 %v466_v0 }
   0x5   :  { %16 = vsyncpa [#allocation4], 0  ;;  %v437_v4 = vld [vmem:[%s576_s3] sm:$0xff]   ;;  %vm110_vm3 = vcmask 130048   ;;  %v438_v10 = vld [vmem:[%s579_s6 + $0x8] sm:$0xff]   ;;  %vm161_vm4 = vcmask 1043456   ;;  %s340_s27 = scvt.s32.f32 %s573_s0  ;;  %v335_v39 = vlaneseq  ;;  %v337_v41 = vstv %s573_s0 }
   0x6   :  { %400 = vmatmul.mubr.msk.bf16.vlgmr.msra.gmra.mxu0 %vm46_vm2, %v38_v2  ;;  %404 = vmatpush3.bf16.msra.mxu1 %v437_v4  ;;  %v374_v11 = vld [vmem:[%s577_s4] ss:$0 sm:$0xff]  ;;  %vm157_vm5 = vcmask 64512   ;;  %vm229_vm6 = vcmask 261120   ;;  %v440_v27 = vld [vmem:[%s581_s8 + $0x8] sm:$0xff]   ;;  %vm344_vm8 = vcmask 27648  }
   0x7   :  { %411 = vmatprep.mubr.msk.bf16.mxu0 %vm467_vm1, %v466_v0  ;;  %415 = vmatprep.subr.bf16.mxu1 %v466_v0  ;;  %v156_v20 = vld [vmem:[%s578_s5] sm:$0x3]  ;;  %v341_v29 = vstv %s340_s27  ;;  %v336_v40 = vshrl.u32 %v335_v39, 7  ;;  %s468_s0 = smov [#allocation3]   ;;  %vm356_vm9 = vcmask 24576  }
   0x8   :  { %v439_v21 = vld [vmem:[%s579_s6] sm:$0xff]   ;;  %442 = vrcp.f32 %v341_v29  ;;  %s364_s13 = sshll.u32 %s468_s0, 4  ;;  %s365_s13 = int_to_ptr.vmem [resolvable:$true] %s364_s13 }
   0x9   :  { %v441_v28 = vld [vmem:[%s581_s8] sm:$0xff]   ;;  %vm338_vm7 = vcmp.lt.s32.totalorder %v336_v40, %v337_v41  ;;  %s444_s14 = scalar_lea.vmem %s365_s13, 16  ;;  %s448_s15 = scalar_lea.vmem %s365_s13, 32 }
   0xa   :  { %v378_v31 = vld [vmem:[%s580_s7] ss:$0 sm:$0xff]  ;;  %p445_p0 = scmp.ne.s32.totalorder %s365_s13, %s444_s14  ;;  %p449_p1 = scmp.lt.s32.totalorder %s365_s13, %s365_s13 }
   0xb   :  { %v354_v55 = vld [vmem:[%s582_s9] sm:$0x1]  ;;  %p450_p2 = scmp.lt.s32.totalorder %s448_s15, %s444_s14 }
   0xd   :  { %p451_p3 = por %p450_p2, %p449_p1 }
   0xf   :  { %p452_p4 = pnand %p451_p3, %p445_p0 }
  0x15   :  { %v443_v30 = vpop.eup %442 }
  0x16   :  { %431 = vpush %v443_v30 }
  0x47   :  { %s432_s7 = spop %431 }
  0x48   :  { %v352_v53 = vstv %s432_s7 }
  0xc6   :  { %v88_v5 = vpop.f32.mrf.mxu0 }
  0xc7   :  { %v94_v6 = vpack.c.bf16 %v88_v5, %v88_v5 }
  0xc8   :  { %v401_v7 = vpop.f32.mrf.mxu0 }
  0xc9   :  { %406 = vmatmul.mubr.msk.bf16.vlgmr.msra.gmra.mxu1 %vm110_vm3, %v94_v6 }
  0xca   :  { %v91_v8 = vpop.f32.mrf.mxu0  ;;  %419 = vmatprep.mubr.msk.bf16.mxu1 %vm467_vm1, %v466_v0  ;;  %416 = vmatpush3.bf16.msra.mxu1 %v438_v10 }
  0xcb   :  { %417 = vmatprep.subr.bf16.mxu1 %v466_v0 }
  0xcc   :  { %v402_v9 = vpop.f32.mrf.mxu0 }
  0xce   :  { %418 = vmatpush3.bf16.msra.mxu1 %v439_v21 }
 0x189   :  { %v148_v12 = vpop.f32.mrf.mxu1 }
 0x18a   :  { %v149_v13 = vadd.f32 %v374_v11, %v148_v12 }
 0x18b   :  { %v407_v14 = vpop.f32.mrf.mxu1 }
 0x18c   :  { %v154_v15 = vmax.f32 %v149_v13, 0.0 }
 0x18d   :  { %v151_v16 = vpop.f32.mrf.mxu1 }
 0x18e   :  { %v155_v17 = vpack.c.bf16 %v154_v15, %v154_v15 }
 0x18f   :  { %v408_v18 = vpop.f32.mrf.mxu1 }
 0x190   :  { %v163_v19 = vsel %vm161_vm4, %v155_v17, 0 }
 0x191   :  { %410 = vmatpush3.bf16.msra.mxu0 %v163_v19 }
 0x192   :  { %423 = vmatprep.subr.bf16.mxu0 %v466_v0 }
 0x194   :  { %412 = vmatmul.mubr.msk.bf16.vlgmr.msra.gmra.mxu0 %vm157_vm5, %v156_v20 }
 0x195   :  { %427 = vmatprep.mubr.msk.bf16.mxu0 %vm467_vm1, %v466_v0  ;;  %424 = vmatpush3.bf16.msra.mxu0 %v440_v27 }
 0x196   :  { %425 = vmatprep.subr.bf16.mxu0 %v466_v0 }
 0x199   :  { %426 = vmatpush3.bf16.msra.mxu0 %v441_v28 }
 0x254   :  { %v199_v22 = vpop.f32.mrf.mxu0 }
 0x255   :  { %v205_v23 = vpack.c.bf16 %v199_v22, %v199_v22 }
 0x256   :  { %v413_v24 = vpop.f32.mrf.mxu0 }
 0x257   :  { %420 = vmatmul.mubr.msk.bf16.vlgmr.msra.gmra.mxu1 %vm229_vm6, %v205_v23 }
 0x258   :  { %v202_v25 = vpop.f32.mrf.mxu0 }
 0x25a   :  { %v414_v26 = vpop.f32.mrf.mxu0 }
 0x317   :  { %v267_v32 = vpop.f32.mrf.mxu1 }
 0x318   :  { %v268_v33 = vadd.f32 %v378_v31, %v267_v32 }
 0x319   :  { %v421_v34 = vpop.f32.mrf.mxu1 }
 0x31a   :  { %v273_v35 = vmax.f32 %v268_v33, 0.0 }
 0x31b   :  { %v270_v36 = vpop.f32.mrf.mxu1 }
 0x31c   :  { %v274_v37 = vpack.c.bf16 %v273_v35, %v273_v35 }
 0x31d   :  { %v422_v38 = vpop.f32.mrf.mxu1 }
 0x31e   :  { %428 = vmatmul.mubr.msk.bf16.vlgmr.msra.gmra.mxu0 %vm229_vm6, %v274_v37 }
 0x3de   :  { %v328_v42 = vpop.f32.mrf.mxu0 }
 0x3df   :  { %v339_v43 = vsel %vm338_vm7, %v328_v42, 0.0 }
 0x3e0   :  { %v345_v44 = vsel %vm344_vm8, %v339_v43, 0.0  ;;  %v429_v45 = vpop.f32.mrf.mxu0 }
 0x3e1   :  { %v346_v46 = vrot.slane %v345_v44, 4 }
 0x3e2   :  { %v331_v47 = vpop.f32.mrf.mxu0 }
 0x3e3   :  { %v347_v48 = vadd.f32 %v346_v46, %v345_v44 }
 0x3e4   :  { %v430_v49 = vpop.f32.mrf.mxu0 }
 0x3e5   :  { %v348_v50 = vrot.slane %v347_v48, 2 }
 0x3e7   :  { %v349_v51 = vadd.f32 %v348_v50, %v347_v48 }
 0x3e9   :  { %v350_v52 = vrot.slane %v349_v51, 1 }
 0x3eb   :  { %v351_v54 = vadd.f32 %v350_v52, %v349_v51 }
 0x3ed   :  { %v353_v56 = vmul.f32 %v352_v53, %v351_v54 }
 0x3ef   :  { %v355_v57 = vadd.f32 %v354_v55, %v353_v56 }
 0x3f1   :  { %357 = vst.msk [vmem:[#allocation3] sm:$0x1] %vm356_vm9, %v355_v57 }
 0x3f2   :  { %455 = shalt.err (!%p452_p4)
}
 0x3f3   :  { %367 = dma.vmem_to_hbm [thread:$0]  %s365_s13, 16, %s583_s10, [#allocation4]  }
 0x3f4   :  { %464 = dma.done.wait [#allocation4], 16  }
 0x3f5   :  { %465 = vsyncadd [#allocation4], 4294967280 }
 0x3f6   :  { %371 = vsyncpa [#allocation4], 1 }

</bundles_post_ra>
